<compile_context>
chip_gen: v7x
topology: tpu7x:2x2x1
jax: 0.10.0
libtpu: 0.0.40
codegen_flags: <defaults>
</compile_context>

<pallas_src>
import functools
import math

import jax
import jax.numpy as jnp
from jax.experimental import pallas as pl
from jax.experimental.pallas import tpu as pltpu


_SELECT_MAX_PACK = 4                        # longest select chain (3 wheres)
_MAX_LANE_WIDTH = 4096                      # guard on packed lane width
_PIPELINE_VMEM_BUDGET = 16 * 1024 * 1024    # double-buffered in+out blocks
_VMEM_LIMIT_BYTES = 32 * 1024 * 1024        # <= physical VMEM on v5e/v6e/v7x


def _round_up(v, q):
    return -(-v // q) * q


def _gaussian_rbf_kernel(x_ref, e_ref, params_ref, o_ref, *, n_rbf, pack):
    """Compute one (r_blk, lane_width) output tile.

    x_ref:      (R, pack)   packed distances (pack consecutive distances / row)
    e_ref:      (pack, L)   one-hot expansion matrix (unused when pack <= 4)
    params_ref: (2, L)      row 0 = tiled offsets, row 1 = tiled -0.5/width^2
    o_ref:      (R, L)      lane-dense output tile, L = pack * n_rbf
    """
    x = x_ref[...]                       # (R, pack)
    off = params_ref[0:1, :]             # (1, L)
    coeff = params_ref[1:2, :]           # (1, L)

    if pack == 1:
        x_exp = x                        # (R, 1) broadcasts against (1, L)
    elif pack <= _SELECT_MAX_PACK:
        # Short select chain (<= 3 wheres): pure VPU work, plenty of VALU slack.
        lane = jax.lax.broadcasted_iota(jnp.int32, (1, o_ref.shape[-1]), 1)
        x_exp = x[:, 0:1]
        for p in range(1, pack):
            x_exp = jnp.where(lane >= p * n_rbf, x[:, p:p + 1], x_exp)
    else:
        # Large pack (n_rbf does not divide 128, e.g. 20 or 50): expand on the
        # otherwise idle MXU with a one-hot matrix instead of a long select
        # chain, leaving only ~3 VPU ops + the EUP exp per output element.
        # HIGHEST precision keeps the result f32-exact (single nonzero product
        # per output element).
        x_exp = jax.lax.dot_general(
            x, e_ref[...],
            dimension_numbers=(((1,), (0,)), ((), ())),
            precision=jax.lax.Precision.HIGHEST,
            preferred_element_type=jnp.float32)     # (R, L)

    diff = x_exp - off
    o_ref[...] = jnp.exp(coeff * (diff * diff))


@functools.partial(jax.jit, static_argnames=("block_lane_rows",))
def gaussian_rbf_pallas(inputs, offsets, widths, *, block_lane_rows=8192):
    """Gaussian RBF expansion.  Returns shape inputs.shape + (n_rbf,)."""
    orig_shape = inputs.shape
    n_rbf = offsets.shape[0]

    # Lane packing: view the row-major (N, n_rbf) output as
    # (N // pack, pack * n_rbf) with pack * n_rbf a multiple of 128, so every
    # output store is a full, unmasked 128-lane store and the reshape back is
    # a zero-copy view.  pack = 128 / gcd(n_rbf, 128) gives zero padding for
    # any n_rbf (20 -> pack 32 / L 640, 50 -> 64 / 3200, 32 -> 4 / 128).
    pack = 128 // math.gcd(n_rbf, 128)
    if pack * n_rbf > _MAX_LANE_WIDTH:
        pack = 1                              # pathological n_rbf: masked tail
    lane_width = pack * n_rbf

    x_flat = inputs.reshape(-1).astype(jnp.float32)
    n = x_flat.shape[0]
    m = -(-n // pack)                         # packed lane-rows
    pad = m * pack - n
    if pad:
        x_flat = jnp.pad(x_flat, (0, pad))    # tiny (< pack elements) pad
    x_packed = x_flat.reshape(m, pack)        # zero-copy view

    offs = offsets.astype(jnp.float32)
    coeff = -0.5 / (widths.astype(jnp.float32) ** 2)
    params = jnp.stack([jnp.tile(offs, pack), jnp.tile(coeff, pack)])   # (2, L)
    # One-hot expansion matrix for the MXU path (tiny; unused when pack <= 4).
    expand = jnp.repeat(jnp.eye(pack, dtype=jnp.float32), n_rbf, axis=1)  # (pack, L)

    # ---- row-tile sizing from an explicit VMEM budget -----------------------
    # The (r_blk, pack) input block is lane-padded to 128 in VMEM, so its
    # double-buffer can cost as much as the output's; account for it and for
    # the small replicated constants so large tiles never blow the scoped
    # VMEM limit on any generation.
    in_row_bytes = _round_up(pack, 128) * 4
    out_row_bytes = _round_up(lane_width, 128) * 4
    fixed_bytes = 2 * (pack + 2) * _round_up(lane_width, 128) * 4
    r_budget = (_PIPELINE_VMEM_BUDGET - fixed_bytes) // (
        2 * (in_row_bytes + out_row_bytes))
    r_budget = max(8, (r_budget // 8) * 8)
    # Keep >= ~8 grid steps (both v7x TensorCores get work; write-back of block
    # i-1 overlaps compute of block i) whenever there is enough work.
    r_for_8_steps = max(8, _round_up(-(-m // 8), 8))
    r_blk = max(8, min(block_lane_rows, r_budget, r_for_8_steps))
    grid = (pl.cdiv(m, r_blk),)

    kernel = functools.partial(_gaussian_rbf_kernel, n_rbf=n_rbf, pack=pack)

    cost = pl.CostEstimate(
        flops=3 * m * lane_width
        + (2 * pack * m * lane_width if pack > _SELECT_MAX_PACK else 0),
        transcendentals=m * lane_width,
        bytes_accessed=4 * (m * pack + m * lane_width + (pack + 2) * lane_width),
    )

    out = pl.pallas_call(
        kernel,
        out_shape=jax.ShapeDtypeStruct((m, lane_width), jnp.float32),
        grid_spec=pltpu.PrefetchScalarGridSpec(
            num_scalar_prefetch=0,
            grid=grid,
            in_specs=[
                pl.BlockSpec((r_blk, pack), lambda i: (i, 0)),
                pl.BlockSpec((pack, lane_width), lambda i: (0, 0)),
                pl.BlockSpec((2, lane_width), lambda i: (0, 0)),
            ],
            out_specs=pl.BlockSpec((r_blk, lane_width), lambda i: (i, 0)),
        ),
        compiler_params=pltpu.CompilerParams(
            dimension_semantics=("parallel",),
            vmem_limit_bytes=_VMEM_LIMIT_BYTES,
        ),
        cost_estimate=cost,
    )(x_packed, expand, params)

    out = out.reshape(m * pack, n_rbf)        # zero-copy view of packed layout
    if pad:
        out = out[:n]
    return out.reshape(*orig_shape, n_rbf)


def make_gaussian_rbf_params(n_rbf: int, cutoff: float, start: float = 0.0):
    """Deterministic parameter init, mirroring GaussianRBF.__init__."""
    offsets = jnp.linspace(start, cutoff, n_rbf, dtype=jnp.float32)
    widths = jnp.abs(offsets[1] - offsets[0]) * jnp.ones_like(offsets)
    return offsets, widths


def gaussian_rbf_reference(inputs, offsets, widths):
    coeff = -0.5 / (widths ** 2)
    diff = inputs[..., None] - offsets
    return jnp.exp(coeff * diff ** 2)


if __name__ == "__main__":
    cutoff = 5.0
    key = jax.random.PRNGKey(0)
    # Small example: batch of 2 molecules, 64 pairwise distances each.
    inputs = jax.random.uniform(key, (2, 64), dtype=jnp.float32,
                                minval=0.0, maxval=cutoff)

    # n_rbf=32 exercises the select-chain path (pack=4, L=128);
    # n_rbf=20 exercises the MXU-expansion path (pack=32, L=640).
    for n_rbf in (32, 20):
        offsets, widths = make_gaussian_rbf_params(n_rbf, cutoff)
        out = jax.block_until_ready(gaussian_rbf_pallas(inputs, offsets, widths))
        ref = gaussian_rbf_reference(inputs, offsets, widths)
        assert out.shape == (2, 64, n_rbf), out.shape
        assert jnp.allclose(out, ref, atol=1e-6, rtol=5e-5), (
            f"mismatch vs reference for n_rbf={n_rbf}")

    print("KERNEL_OK")
</pallas_src>

<mosaic_0001>
module attributes {stable_mosaic.version = 11 : i64} {
  func.func @_gaussian_rbf_kernel(%arg0: i32, %arg1: memref<8x4xf32, #tpu.memory_space<vmem>>, %arg2: memref<4x128xf32, #tpu.memory_space<vmem>>, %arg3: memref<2x128xf32, #tpu.memory_space<vmem>>, %arg4: memref<8x128xf32, #tpu.memory_space<vmem>>) attributes {dimension_semantics = [#tpu.dimension_semantics<parallel>], iteration_bounds = array<i64: 4>, scalar_prefetch = 0 : i64, scratch_operands = 0 : i64, tpu.core_type = #tpu.core_type<tc>, window_params = [{transform_indices = @transform_0, window_bounds = array<i64: 8, 4>}, {pipeline_mode = #tpu.pipeline_mode<synchronous>, transform_indices = @transform_1, window_bounds = array<i64: 4, 128>}, {pipeline_mode = #tpu.pipeline_mode<synchronous>, transform_indices = @transform_2, window_bounds = array<i64: 2, 128>}, {transform_indices = @transform_3, window_bounds = array<i64: 8, 128>}]} {
    %c0 = arith.constant 0 : index
    %c0_0 = arith.constant 0 : index
    %0 = vector.load %arg1[%c0, %c0_0] : memref<8x4xf32, #tpu.memory_space<vmem>>, vector<8x4xf32>
    %c0_1 = arith.constant 0 : index
    %c0_2 = arith.constant 0 : index
    %1 = vector.load %arg3[%c0_1, %c0_2] : memref<2x128xf32, #tpu.memory_space<vmem>>, vector<1x128xf32>
    %c1 = arith.constant 1 : index
    %c0_3 = arith.constant 0 : index
    %2 = vector.load %arg3[%c1, %c0_3] : memref<2x128xf32, #tpu.memory_space<vmem>>, vector<1x128xf32>
    %3 = tpu.iota {dimensions = array<i32: 1>} : vector<1x128xi32>
    %4 = vector.extract_strided_slice %0 {offsets = [0, 0], sizes = [8, 1], strides = [1, 1]} : vector<8x4xf32> to vector<8x1xf32>
    %c32_i32 = arith.constant 32 : i32
    %5 = vector.broadcast %c32_i32 : i32 to vector<1x128xi32>
    %6 = arith.cmpi sge, %3, %5 : vector<1x128xi32>
    %7 = vector.extract_strided_slice %0 {offsets = [0, 1], sizes = [8, 1], strides = [1, 1]} : vector<8x4xf32> to vector<8x1xf32>
    %8 = vector.shape_cast %6 : vector<1x128xi1> to vector<1x128xi1>
    %9 = vector.broadcast %8 : vector<1x128xi1> to vector<8x128xi1>
    %10 = vector.shape_cast %7 : vector<8x1xf32> to vector<8x1xf32>
    %11 = vector.broadcast %10 : vector<8x1xf32> to vector<8x128xf32>
    %12 = vector.shape_cast %4 : vector<8x1xf32> to vector<8x1xf32>
    %13 = vector.broadcast %12 : vector<8x1xf32> to vector<8x128xf32>
    %14 = arith.select %9, %11, %13 : vector<8x128xi1>, vector<8x128xf32>
    %c64_i32 = arith.constant 64 : i32
    %15 = vector.broadcast %c64_i32 : i32 to vector<1x128xi32>
    %16 = arith.cmpi sge, %3, %15 : vector<1x128xi32>
    %17 = vector.extract_strided_slice %0 {offsets = [0, 2], sizes = [8, 1], strides = [1, 1]} : vector<8x4xf32> to vector<8x1xf32>
    %18 = vector.shape_cast %16 : vector<1x128xi1> to vector<1x128xi1>
    %19 = vector.broadcast %18 : vector<1x128xi1> to vector<8x128xi1>
    %20 = vector.shape_cast %17 : vector<8x1xf32> to vector<8x1xf32>
    %21 = vector.broadcast %20 : vector<8x1xf32> to vector<8x128xf32>
    %22 = arith.select %19, %21, %14 : vector<8x128xi1>, vector<8x128xf32>
    %c96_i32 = arith.constant 96 : i32
    %23 = vector.broadcast %c96_i32 : i32 to vector<1x128xi32>
    %24 = arith.cmpi sge, %3, %23 : vector<1x128xi32>
    %25 = vector.extract_strided_slice %0 {offsets = [0, 3], sizes = [8, 1], strides = [1, 1]} : vector<8x4xf32> to vector<8x1xf32>
    %26 = vector.shape_cast %24 : vector<1x128xi1> to vector<1x128xi1>
    %27 = vector.broadcast %26 : vector<1x128xi1> to vector<8x128xi1>
    %28 = vector.shape_cast %25 : vector<8x1xf32> to vector<8x1xf32>
    %29 = vector.broadcast %28 : vector<8x1xf32> to vector<8x128xf32>
    %30 = arith.select %27, %29, %22 : vector<8x128xi1>, vector<8x128xf32>
    %31 = vector.broadcast %1 : vector<1x128xf32> to vector<8x128xf32>
    %32 = arith.subf %30, %31 : vector<8x128xf32>
    %33 = arith.mulf %32, %32 : vector<8x128xf32>
    %34 = vector.broadcast %2 : vector<1x128xf32> to vector<8x128xf32>
    %35 = arith.mulf %34, %33 : vector<8x128xf32>
    %36 = math.exp %35 : vector<8x128xf32>
    %c0_4 = arith.constant 0 : index
    %c0_5 = arith.constant 0 : index
    %37 = vector.load %arg4[%c0_4, %c0_5] : memref<8x128xf32, #tpu.memory_space<vmem>>, vector<8x128xf32>
    tpu.vector_store %arg4[%c0_4, %c0_5], %36 {strides = array<i32>} : memref<8x128xf32, #tpu.memory_space<vmem>>, vector<8x128xf32>,
    return
  }
  func.func @transform_0(%arg0: i32) -> (i32, i32) {
    %c0_i32 = arith.constant 0 : i32
    %c0_i32_0 = arith.constant 0 : i32
    return %arg0, %c0_i32 : i32, i32
  }
  func.func @transform_1(%arg0: i32) -> (i32, i32) {
    %c0_i32 = arith.constant 0 : i32
    %c0_i32_0 = arith.constant 0 : i32
    %c0_i32_1 = arith.constant 0 : i32
    return %c0_i32, %c0_i32_0 : i32, i32
  }
  func.func @transform_2(%arg0: i32) -> (i32, i32) {
    %c0_i32 = arith.constant 0 : i32
    %c0_i32_0 = arith.constant 0 : i32
    %c0_i32_1 = arith.constant 0 : i32
    return %c0_i32, %c0_i32_0 : i32, i32
  }
  func.func @transform_3(%arg0: i32) -> (i32, i32) {
    %c0_i32 = arith.constant 0 : i32
    %c0_i32_0 = arith.constant 0 : i32
    return %arg0, %c0_i32 : i32, i32
  }
}

</mosaic_0001>

<bundles_post_ra>
// kernel: tile.17
= control target key start
LH: loop header
LB: loop body
LE: loop exit
PB: predicated region body
PF: predicated region fallthrough
CT: control target
= control target key end

     0   :  { %s22_s0 = inlined_call_operand.vmem [shape: f32[32], index: 0, kind: input, shape index: {}]   ;;  %s23_s1 = inlined_call_operand.vmem [shape: f32[4,32], index: 1, kind: output, shape index: {}]  }
   0x1   :  { %v4_v0 = vld [vmem:[%s22_s0] ss:$0 sm:$0xff] }
   0x2   :  { %5 = vst [vmem:[%s23_s1] sm:$0xf] %v4_v0 }

// kernel: tile.19
= control target key start
LH: loop header
LB: loop body
LE: loop exit
PB: predicated region body
PF: predicated region fallthrough
CT: control target
= control target key end

     0   :  { %vm7_vm0 = vcmask 261120   ;;  %s37_s8 = smov 32   ;;  %s38_s9 = smov 64   ;;  %vm13_vm1 = vcmask 1048320   ;;  %vm19_vm2 = vcmask 785920   ;;  %vm25_vm3 = vcmask 523520   ;;  %s55_s0 = inlined_call_operand.vmem [shape: f32[4,32], index: 0, kind: input, shape index: {}]   ;;  %s56_s1 = inlined_call_operand.vmem [shape: f32[1,128], index: 1, kind: output, shape index: {}]  }
   0x1   :  { %v4_v0 = vld [vmem:[%s55_s0] sm:$0xf]  ;;  %s36_s0 = smov 96  }
   0x2   :  { %5 = vst [vmem:[#allocation1] sm:$0xf] %v4_v0 }
   0x9   :  { %v10_v1 = vld [vmem:[#allocation1 + $0x3] sm:$0x1]   ;;  %v22_v2 = vld [vmem:[#allocation1 + $0x1] sm:$0x1]   ;;  %v6_v3 = vld [vmem:[#allocation1] sm:$0x1]  }
   0xa   :  { %11 = vrot.lane.b32.xlu0 %v10_v1, %s36_s0  ;;  %23 = vrot.lane.b32.xlu1 %v22_v2, %s37_s8  ;;  %v16_v4 = vld [vmem:[#allocation1 + $0x2] sm:$0x1]   ;;  %8 = vst.msk [vmem:[#allocation0] sm:$0x1] %vm7_vm0, %v6_v3  }
   0xe   :  { %17 = vrot.lane.b32.xlu0 %v16_v4, %s38_s9 }
  0x7c   :  { %v12_v5 = vpop.permute.xlu0 %11   ;;  %v24_v6 = vpop.permute.xlu1 %23  }
  0x7d   :  { %14 = vst.msk [vmem:[#allocation0] sm:$0x1] %vm13_vm1, %v12_v5  }
  0x80   :  { %v18_v7 = vpop.permute.xlu0 %17  }
  0x81   :  { %20 = vst.msk [vmem:[#allocation0] sm:$0x1] %vm19_vm2, %v18_v7  }
  0x82   :  { %26 = vst.msk [vmem:[#allocation0] sm:$0x1] %vm25_vm3, %v24_v6  }
  0x89   :  { %v30_v8 = vld [vmem:[#allocation0] sm:$0x1] }
  0x8a   :  { %32 = vst [vmem:[%s56_s1] sm:$0x1] %v30_v8 }

// kernel: gaussian_rbf_pallas.1
= control target key start
LH: loop header
LB: loop body
LE: loop exit
PB: predicated region body
PF: predicated region fallthrough
CT: control target
= control target key end

     0   :  { %s329_s12 = smov 0   ;;  %s359_s0 = inlined_call_operand.vmem [shape: f32[32,4], index: 0, kind: input, shape index: {}]   ;;  %s360_s1 = inlined_call_operand.vmem [shape: f32[4,128], index: 1, kind: input, shape index: {}]   ;;  %s361_s2 = inlined_call_operand.vmem [shape: f32[2,128], index: 2, kind: input, shape index: {}]   ;;  %s362_s3 = inlined_call_operand.vmem [shape: f32[32,128], index: 3, kind: output, shape index: {}]  }
   0x1 LB: > { %s267_s13 = sadd.s32 4294967295, %s303_s12   ;;  %p271_p0 = scmp.ge.s32.totalorder %s303_s12, 1  ;;  %s303_s12 = sphi %s329_s12, %s13_s12  }
   0x2   : > { %p136_p1 = scmp.lt.s32.totalorder %s303_s12, 5 }
   0x4   : > { %p137_p2 = pnand %p271_p0, %p136_p1 }
   0x5   : > { %p158_p3 = scmp.lt.s32.totalorder (!%p137_p2), %s267_s13, 3  ;;  %v305_v0 = vmov (!%p137_p2), 1   ;;  %v306_v1 = vmov (!%p137_p2), 2   ;;  %v307_v3 = vmov (!%p137_p2), 0   ;;  %v308_v4 = vmov (!%p137_p2), 3  }
   0x6   : > { %140 = sbr.rel (%p137_p2) target bundleno = 173 (0xad), region = 32  ;;  %290 = vset.pattern.permute.xlu0 (!%p137_p2), %v305_v0  ;;  %292 = vset.pattern.permute.xlu1 (!%p137_p2), %v306_v1  ;;  %v169_v5 = vlaneseq (!%p137_p2)  ;;  %v274_v12 = vld [vmem:[%s361_s2] ss:$0 sm:$0xff] (!%p137_p2)  ;;  %v275_v16 = vld [vmem:[%s361_s2 + $0x1] ss:$0 sm:$0xff] (!%p137_p2) }
   0x8   : > { %v170_v6 = vand.u32 (!%p137_p2), 127, %v169_v5 }
   0xa   : > { %vm171_vm0 = vcmp.ge.s32.totalorder (!%p137_p2), %v170_v6, 32  ;;  %vm184_vm1 = vcmp.ge.s32.totalorder (!%p137_p2), %v170_v6, 64  ;;  %vm192_vm2 = vcmp.ge.s32.totalorder (!%p137_p2), %v170_v6, 96 }
   0xd   : > { %s364_s13 = smov (!%p158_p3, %s267_s13), 3 }
   0xe   : > { %s272_s1 = sshll.u32 %s364_s13, 3 }
   0xf   : > { %s161_s16 = scalar_lea.vmem %s359_s0, %s272_s1  ;;  %s165_s23 = scalar_lea.vmem %s362_s3, %s272_s1 }
  0x10   : > { %v166_v2 = vld [vmem:[%s161_s16] sm:$0xff] }
  0x11   : > { %176 = vperm.xlu0 %290, %v166_v2   ;;  %188 = vperm.xlu1 %292, %v166_v2  }
  0x15   : > { %291 = vset.pattern.permute.xlu0 %v307_v3  ;;  %293 = vset.pattern.permute.xlu1 %v308_v4 }
  0x16   : > { %180 = vperm.xlu0 %291, %v166_v2   ;;  %196 = vperm.xlu1 %293, %v166_v2  }
  0x1a   : > { %294 = vset.pattern.permute.xlu0 %v308_v4 }
  0x90   : > { %v177_v7 = vpop.permute.xlu0 %176  ;;  %v189_v8 = vpop.permute.xlu1 %188 }
  0x95   : > { %v181_v9 = vpop.permute.xlu0 %180  ;;  %v197_v10 = vpop.permute.xlu1 %196 }
  0x96   : > { %v183_v11 = vsel %vm171_vm0, %v177_v7, %v181_v9 }
  0x97   : > { %v191_v13 = vsel %vm184_vm1, %v189_v8, %v183_v11 }
  0x98   : > { %v199_v14 = vsel %vm192_vm2, %v197_v10, %v191_v13 }
  0x99   : > { %v204_v15 = vsub.f32 %v199_v14, %v274_v12 }
  0x9b   : > { %v205_v17 = vmul.f32 %v204_v15, %v204_v15 }
  0x9d   : > { %v210_v18 = vmul.f32 %v275_v16, %v205_v17 }
  0x9f   : > { %v211_v19 = vmul.f32 1.442695, %v210_v18 }
  0xa1   : > { %295 = vpow2.f32 %v211_v19 }
  0xab   : > { %v296_v20 = vpop.eup %295 }
  0xac   : > { %213 = vst [vmem:[%s165_s23] sm:$0xff] %v296_v20 }
  0xad PF: > { %s13_s12 = sadd.s32 1, %s303_s12  }
  0xae   : > { %p10_p4 = scmp.ge.s32.totalorder %s13_s12, 6  }
  0xb0   :  { %12 = sbr.rel (!%p10_p4) target bundleno = 1 (0x1), region = 62 }

</bundles_post_ra>
